<compile_context>
chip_gen: v7x
topology: tpu7x:2x2x1
jax: 0.10.0
libtpu: 0.0.40
codegen_flags: <defaults>
</compile_context>

<pallas_src>
import jax
import jax.numpy as jnp
from jax.experimental import pallas as pl
from jax.experimental.pallas import tpu as pltpu

_HIDDEN = 256
_LANE = 128


def _round_up(x, m):
    return (x + m - 1) // m * m


def _actor_kernel(ma_ref, x_ref, w1_ref, b1_ref, w2_ref, b2_ref, w3_ref, b3_ref,
                  out_ref):
    ma = ma_ref[0, 0]
    # MXU operands in bf16 (halves HBM bytes / MXU passes on v6e/v7x, still a
    # win on v5e); accumulate in f32; keep bias/ReLU/tanh in f32 since v5e's
    # VPU/EUP have no bf16 path.
    x = x_ref[...].astype(jnp.bfloat16)

    h1 = jnp.dot(x, w1_ref[...], preferred_element_type=jnp.float32)
    h1 = jnp.maximum(h1 + b1_ref[...], 0.0)

    h2 = jnp.dot(h1.astype(jnp.bfloat16), w2_ref[...],
                 preferred_element_type=jnp.float32)
    h2 = jnp.maximum(h2 + b2_ref[...], 0.0)

    h3 = jnp.dot(h2.astype(jnp.bfloat16), w3_ref[...],
                 preferred_element_type=jnp.float32)
    out_ref[...] = (ma * jnp.tanh(h3 + b3_ref[...])).astype(out_ref.dtype)


def actor_forward(state, params, max_action):
    """Fused 3-layer MLP forward (ReLU, ReLU, Tanh) as a single Pallas kernel.

    state:  (B, state_dim) float32
    params: dict with w1 (S,256), b1 (1,256), w2 (256,256), b2 (1,256),
            w3 (256,A), b3 (1,A)   -- weights stored (in, out), float32
    max_action: python float or scalar array (passed via SMEM, no recompile)
    """
    B, S = state.shape
    H = params["w1"].shape[1]
    A = params["w3"].shape[1]

    # Batch tile: multiple of 8 sublanes; 256 rows fills the v6e/v7x MXU.
    if B <= 256:
        tb = _round_up(max(B, 1), 8)
    else:
        tb = 256
    b_pad = _round_up(B, tb)

    # Lane-dense output: pad the action dim to a multiple of 128.
    a_pad = _round_up(A, _LANE)

    # bf16 weights (padded last layer); biases stay f32.
    w1 = params["w1"].astype(jnp.bfloat16)
    w2 = params["w2"].astype(jnp.bfloat16)
    w3 = jnp.zeros((H, a_pad), jnp.bfloat16).at[:, :A].set(
        params["w3"].astype(jnp.bfloat16))
    b1 = params["b1"].reshape(1, H).astype(jnp.float32)
    b2 = params["b2"].reshape(1, H).astype(jnp.float32)
    b3 = jnp.zeros((1, a_pad), jnp.float32).at[:, :A].set(
        params["b3"].reshape(1, A).astype(jnp.float32))

    x = state.astype(jnp.float32)
    if b_pad != B:
        x = jnp.pad(x, ((0, b_pad - B), (0, 0)))

    ma = jnp.asarray(max_action, jnp.float32).reshape(1, 1)

    grid = (b_pad // tb,)
    const = lambda i: (0, 0)   # weights/biases: same block every step -> VMEM-resident

    in_specs = [
        pl.BlockSpec(memory_space=pltpu.MemorySpace.SMEM),   # max_action scalar
        pl.BlockSpec((tb, S), lambda i: (i, 0)),             # state tile (streams)
        pl.BlockSpec((S, H), const),                         # w1
        pl.BlockSpec((1, H), const),                         # b1
        pl.BlockSpec((H, H), const),                         # w2
        pl.BlockSpec((1, H), const),                         # b2
        pl.BlockSpec((H, a_pad), const),                     # w3 (lane-padded)
        pl.BlockSpec((1, a_pad), const),                     # b3 (lane-padded)
    ]
    out_spec = pl.BlockSpec((tb, a_pad), lambda i: (i, 0))   # lane-dense output tile

    flops = 2 * b_pad * (S * H + H * H + H * a_pad)
    bytes_accessed = (
        b_pad * S * 4 + b_pad * a_pad * 4                 # state in, out
        + (w1.size + w2.size + w3.size) * 2               # bf16 weights
        + (b1.size + b2.size + b3.size) * 4               # f32 biases
    )
    cost = pl.CostEstimate(flops=flops,
                           transcendentals=b_pad * a_pad,
                           bytes_accessed=bytes_accessed)

    out = pl.pallas_call(
        _actor_kernel,
        out_shape=jax.ShapeDtypeStruct((b_pad, a_pad), jnp.float32),
        grid=grid,
        in_specs=in_specs,
        out_specs=out_spec,
        compiler_params=pltpu.CompilerParams(
            dimension_semantics=("parallel",)),              # 2 TCs on v7x
        cost_estimate=cost,
    )(ma, x, w1, b1, w2, b2, w3, b3)

    return out[:B, :A]


def init_actor_params(key, state_dim, action_dim, hidden=_HIDDEN):
    """Deterministic synthetic parameters (shapes match nn.Linear layers, transposed)."""
    k1, k2, k3 = jax.random.split(key, 3)
    scale1 = 1.0 / jnp.sqrt(state_dim)
    scale2 = 1.0 / jnp.sqrt(hidden)
    return {
        "w1": jax.random.uniform(k1, (state_dim, hidden), jnp.float32, -scale1, scale1),
        "b1": jnp.zeros((1, hidden), jnp.float32),
        "w2": jax.random.uniform(k2, (hidden, hidden), jnp.float32, -scale2, scale2),
        "b2": jnp.zeros((1, hidden), jnp.float32),
        "w3": jax.random.uniform(k3, (hidden, action_dim), jnp.float32, -scale2, scale2),
        "b3": jnp.zeros((1, action_dim), jnp.float32),
    }


def _reference(state, params, max_action):
    h = jnp.maximum(state @ params["w1"] + params["b1"], 0.0)
    h = jnp.maximum(h @ params["w2"] + params["b2"], 0.0)
    return max_action * jnp.tanh(h @ params["w3"] + params["b3"])


if __name__ == "__main__":
    # Small D4RL-like shapes: state_dim=17, action_dim=6
    state_dim, action_dim = 17, 6
    max_action = 1.0

    key = jax.random.PRNGKey(0)
    k_param, k_small, k_big = jax.random.split(key, 3)
    params = init_actor_params(k_param, state_dim, action_dim)

    # Case 1: tiny inference-style batch (single grid step, padded to 8 rows).
    state_small = jax.random.normal(k_small, (4, state_dim), jnp.float32)
    out_small = jax.block_until_ready(actor_forward(state_small, params, max_action))
    ref_small = _reference(state_small, params, max_action)
    assert out_small.shape == (4, action_dim)
    assert jnp.allclose(out_small, ref_small, atol=2e-2, rtol=2e-2), (
        float(jnp.max(jnp.abs(out_small - ref_small))))

    # Case 2: training-style batch exercising the batch grid (TB=256, grid=(2,)).
    state_big = jax.random.normal(k_big, (384, state_dim), jnp.float32)
    out_big = jax.block_until_ready(actor_forward(state_big, params, max_action))
    ref_big = _reference(state_big, params, max_action)
    assert out_big.shape == (384, action_dim)
    assert jnp.allclose(out_big, ref_big, atol=2e-2, rtol=2e-2), (
        float(jnp.max(jnp.abs(out_big - ref_big))))

    print("KERNEL_OK")
</pallas_src>

<mosaic_0001>
module attributes {stable_mosaic.version = 11 : i64} {
  func.func @_actor_kernel(%arg0: i32, %arg1: memref<1x1xf32, #tpu.memory_space<smem>>, %arg2: memref<8x17xf32, #tpu.memory_space<vmem>>, %arg3: memref<17x256xbf16, #tpu.memory_space<vmem>>, %arg4: memref<1x256xf32, #tpu.memory_space<vmem>>, %arg5: memref<256x256xbf16, #tpu.memory_space<vmem>>, %arg6: memref<1x256xf32, #tpu.memory_space<vmem>>, %arg7: memref<256x128xbf16, #tpu.memory_space<vmem>>, %arg8: memref<1x128xf32, #tpu.memory_space<vmem>>, %arg9: memref<8x128xf32, #tpu.memory_space<vmem>>) attributes {dimension_semantics = [#tpu.dimension_semantics<parallel>], iteration_bounds = array<i64: 1>, scalar_prefetch = 0 : i64, scratch_operands = 0 : i64, tpu.core_type = #tpu.core_type<tc>, window_params = [{transform_indices = @transform_0, window_bounds = array<i64: 1, 1>}, {transform_indices = @transform_1, window_bounds = array<i64: 8, 17>}, {pipeline_mode = #tpu.pipeline_mode<synchronous>, transform_indices = @transform_2, window_bounds = array<i64: 17, 256>}, {pipeline_mode = #tpu.pipeline_mode<synchronous>, transform_indices = @transform_3, window_bounds = array<i64: 1, 256>}, {pipeline_mode = #tpu.pipeline_mode<synchronous>, transform_indices = @transform_4, window_bounds = array<i64: 256, 256>}, {pipeline_mode = #tpu.pipeline_mode<synchronous>, transform_indices = @transform_5, window_bounds = array<i64: 1, 256>}, {pipeline_mode = #tpu.pipeline_mode<synchronous>, transform_indices = @transform_6, window_bounds = array<i64: 256, 128>}, {pipeline_mode = #tpu.pipeline_mode<synchronous>, transform_indices = @transform_7, window_bounds = array<i64: 1, 128>}, {transform_indices = @transform_8, window_bounds = array<i64: 8, 128>}]} {
    %c0 = arith.constant 0 : index
    %c0_0 = arith.constant 0 : index
    %0 = memref.load %arg1[%c0, %c0_0] : memref<1x1xf32, #tpu.memory_space<smem>>
    %c0_1 = arith.constant 0 : index
    %c0_2 = arith.constant 0 : index
    %1 = vector.load %arg2[%c0_1, %c0_2] : memref<8x17xf32, #tpu.memory_space<vmem>>, vector<8x17xf32>
    %2 = arith.truncf %1 : vector<8x17xf32> to vector<8x17xbf16>
    %c0_3 = arith.constant 0 : index
    %c0_4 = arith.constant 0 : index
    %3 = vector.load %arg3[%c0_3, %c0_4] : memref<17x256xbf16, #tpu.memory_space<vmem>>, vector<17x256xbf16>
    %cst = arith.constant dense<0.000000e+00> : vector<8x256xf32>
    %4 = tpu.matmul %2, %3, %cst {dimension_numbers = #tpu.dot_dimension_numbers<[1], [0], [0], [1], [0, 0, 1, 1], [], []>} : vector<8x17xbf16>, vector<17x256xbf16>, vector<8x256xf32> -> vector<8x256xf32>
    %c0_5 = arith.constant 0 : index
    %c0_6 = arith.constant 0 : index
    %5 = vector.load %arg4[%c0_5, %c0_6] : memref<1x256xf32, #tpu.memory_space<vmem>>, vector<1x256xf32>
    %6 = vector.broadcast %5 : vector<1x256xf32> to vector<8x256xf32>
    %7 = arith.addf %4, %6 : vector<8x256xf32>
    %cst_7 = arith.constant 0.000000e+00 : f32
    %8 = vector.broadcast %cst_7 : f32 to vector<8x256xf32>
    %9 = arith.maximumf %7, %8 : vector<8x256xf32>
    %10 = arith.truncf %9 : vector<8x256xf32> to vector<8x256xbf16>
    %c0_8 = arith.constant 0 : index
    %c0_9 = arith.constant 0 : index
    %11 = vector.load %arg5[%c0_8, %c0_9] : memref<256x256xbf16, #tpu.memory_space<vmem>>, vector<256x256xbf16>
    %cst_10 = arith.constant dense<0.000000e+00> : vector<8x256xf32>
    %12 = tpu.matmul %10, %11, %cst_10 {dimension_numbers = #tpu.dot_dimension_numbers<[1], [0], [0], [1], [0, 0, 1, 1], [], []>} : vector<8x256xbf16>, vector<256x256xbf16>, vector<8x256xf32> -> vector<8x256xf32>
    %c0_11 = arith.constant 0 : index
    %c0_12 = arith.constant 0 : index
    %13 = vector.load %arg6[%c0_11, %c0_12] : memref<1x256xf32, #tpu.memory_space<vmem>>, vector<1x256xf32>
    %14 = vector.broadcast %13 : vector<1x256xf32> to vector<8x256xf32>
    %15 = arith.addf %12, %14 : vector<8x256xf32>
    %cst_13 = arith.constant 0.000000e+00 : f32
    %16 = vector.broadcast %cst_13 : f32 to vector<8x256xf32>
    %17 = arith.maximumf %15, %16 : vector<8x256xf32>
    %18 = arith.truncf %17 : vector<8x256xf32> to vector<8x256xbf16>
    %c0_14 = arith.constant 0 : index
    %c0_15 = arith.constant 0 : index
    %19 = vector.load %arg7[%c0_14, %c0_15] : memref<256x128xbf16, #tpu.memory_space<vmem>>, vector<256x128xbf16>
    %cst_16 = arith.constant dense<0.000000e+00> : vector<8x128xf32>
    %20 = tpu.matmul %18, %19, %cst_16 {dimension_numbers = #tpu.dot_dimension_numbers<[1], [0], [0], [1], [0, 0, 1, 1], [], []>} : vector<8x256xbf16>, vector<256x128xbf16>, vector<8x128xf32> -> vector<8x128xf32>
    %c0_17 = arith.constant 0 : index
    %c0_18 = arith.constant 0 : index
    %21 = vector.load %arg8[%c0_17, %c0_18] : memref<1x128xf32, #tpu.memory_space<vmem>>, vector<1x128xf32>
    %22 = vector.broadcast %21 : vector<1x128xf32> to vector<8x128xf32>
    %23 = arith.addf %20, %22 : vector<8x128xf32>
    %24 = math.tanh %23 : vector<8x128xf32>
    %25 = vector.broadcast %0 : f32 to vector<8x128xf32>
    %26 = arith.mulf %25, %24 : vector<8x128xf32>
    %c0_19 = arith.constant 0 : index
    %c0_20 = arith.constant 0 : index
    %27 = vector.load %arg9[%c0_19, %c0_20] : memref<8x128xf32, #tpu.memory_space<vmem>>, vector<8x128xf32>
    tpu.vector_store %arg9[%c0_19, %c0_20], %26 {strides = array<i32>} : memref<8x128xf32, #tpu.memory_space<vmem>>, vector<8x128xf32>,
    return
  }
  func.func @transform_0(%arg0: i32) -> (i32, i32) {
    %c0_i32 = arith.constant 0 : i32
    %c0_i32_0 = arith.constant 0 : i32
    %c0_i32_1 = arith.constant 0 : i32
    return %c0_i32, %c0_i32_0 : i32, i32
  }
  func.func @transform_1(%arg0: i32) -> (i32, i32) {
    %c0_i32 = arith.constant 0 : i32
    %c0_i32_0 = arith.constant 0 : i32
    return %arg0, %c0_i32 : i32, i32
  }
  func.func @transform_2(%arg0: i32) -> (i32, i32) {
    %c0_i32 = arith.constant 0 : i32
    %c0_i32_0 = arith.constant 0 : i32
    %c0_i32_1 = arith.constant 0 : i32
    return %c0_i32, %c0_i32_0 : i32, i32
  }
  func.func @transform_3(%arg0: i32) -> (i32, i32) {
    %c0_i32 = arith.constant 0 : i32
    %c0_i32_0 = arith.constant 0 : i32
    %c0_i32_1 = arith.constant 0 : i32
    return %c0_i32, %c0_i32_0 : i32, i32
  }
  func.func @transform_4(%arg0: i32) -> (i32, i32) {
    %c0_i32 = arith.constant 0 : i32
    %c0_i32_0 = arith.constant 0 : i32
    %c0_i32_1 = arith.constant 0 : i32
    return %c0_i32, %c0_i32_0 : i32, i32
  }
  func.func @transform_5(%arg0: i32) -> (i32, i32) {
    %c0_i32 = arith.constant 0 : i32
    %c0_i32_0 = arith.constant 0 : i32
    %c0_i32_1 = arith.constant 0 : i32
    return %c0_i32, %c0_i32_0 : i32, i32
  }
  func.func @transform_6(%arg0: i32) -> (i32, i32) {
    %c0_i32 = arith.constant 0 : i32
    %c0_i32_0 = arith.constant 0 : i32
    %c0_i32_1 = arith.constant 0 : i32
    return %c0_i32, %c0_i32_0 : i32, i32
  }
  func.func @transform_7(%arg0: i32) -> (i32, i32) {
    %c0_i32 = arith.constant 0 : i32
    %c0_i32_0 = arith.constant 0 : i32
    %c0_i32_1 = arith.constant 0 : i32
    return %c0_i32, %c0_i32_0 : i32, i32
  }
  func.func @transform_8(%arg0: i32) -> (i32, i32) {
    %c0_i32 = arith.constant 0 : i32
    %c0_i32_0 = arith.constant 0 : i32
    return %arg0, %c0_i32 : i32, i32
  }
}

</mosaic_0001>

<bundles_post_ra>
// kernel: tpu_custom_call.1
= control target key start
LH: loop header
LB: loop body
LE: loop exit
PB: predicated region body
PF: predicated region fallthrough
CT: control target
= control target key end

     0   :  { %14 = vsyncpa [#allocation4], 0  ;;  %s1029_s0 = inlined_call_operand.<no memory space> [shape: f32[1,1], index: 0, kind: input, shape index: {}]   ;;  %s1030_s1 = inlined_call_operand.hbm [shape: f32[8,17], index: 1, kind: input, shape index: {}]   ;;  %s1031_s2 = inlined_call_operand.hbm [shape: bf16[17,256], index: 2, kind: input, shape index: {}]   ;;  %s1032_s3 = inlined_call_operand.vmem [shape: f32[1,256], index: 3, kind: input, shape index: {}]   ;;  %s1033_s4 = inlined_call_operand.hbm [shape: bf16[256,256], index: 4, kind: input, shape index: {}]   ;;  %s1034_s5 = inlined_call_operand.vmem [shape: f32[1,256], index: 5, kind: input, shape index: {}]   ;;  %s1035_s6 = inlined_call_operand.hbm [shape: bf16[256,128], index: 6, kind: input, shape index: {}]   ;;  %s1036_s7 = inlined_call_operand.vmem [shape: f32[1,128], index: 7, kind: input, shape index: {}]   ;;  %s1037_s8 = inlined_call_operand.hbm [shape: f32[8,128], index: 8, kind: output, shape index: {}]  }
   0x1   :  { %15 = vsyncpa [#allocation7], 0 }
   0x2   :  { %16 = vsyncpa [#allocation10], 0 }
   0x3   :  { %17 = vsyncpa [#allocation5], 0  ;;  %s896_s27 = smov [#allocation6]   ;;  %s778_s9 = scalar_lea.hbm %s1031_s2, 384 }
   0x4   :  { %s35_s28 = sshll.u32 %s896_s27, 4  ;;  %p779_p0 = scmp.ne.s32.totalorder %s1031_s2, %s778_s9  ;;  %s36_s28 = int_to_ptr.vmem [resolvable:$true] %s35_s28 }
   0x5   :  { %p782_p1 = scmp.lt.u32.totalorder %s778_s9, %s1031_s2 }
   0x7   :  { %p784_p2 = pnand %p782_p1, %p779_p0 }
   0x9   :  { %787 = shalt.err (!%p784_p2)
}
   0xa   :  { %s788_s14 = scalar_lea.vmem %s36_s28, 384  ;;  %p793_p4 = scmp.lt.s32.totalorder %s36_s28, %s36_s28 }
   0xb   :  { %p789_p3 = scmp.ne.s32.totalorder %s36_s28, %s788_s14  ;;  %p794_p5 = scmp.lt.s32.totalorder %s788_s14, %s788_s14 }
   0xd   :  { %p795_p6 = por %p794_p5, %p793_p4 }
   0xf   :  { %p796_p7 = pnand %p795_p6, %p789_p3 }
  0x11   :  { %799 = shalt.err (!%p796_p7)
}
  0x12   :  { %s897_s15 = smov 128   ;;  %s898_s16 = smov 8  }
  0x13   :  { %41 = dma.hbm_to_vmem [thread:$0]  %s1031_s2, 384, %s36_s28, [#allocation7], %s897_s15, %s897_s15, %s898_s16  }
  0x14   :  { %s899_s19 = smov [#allocation3]   ;;  %s900_s21 = smov [#allocation8]  }
  0x15   :  { %s26_s20 = sshll.u32 %s899_s19, 4  ;;  %s49_s22 = sshll.u32 %s900_s21, 4  ;;  %s27_s20 = int_to_ptr.vmem [resolvable:$true] %s26_s20  ;;  %s50_s22 = int_to_ptr.vmem [resolvable:$true] %s49_s22 }
  0x16   :  { %s800_s25 = scalar_lea.hbm %s1030_s1, 128 }
  0x17   :  { %p801_p8 = scmp.ne.s32.totalorder %s1030_s1, %s800_s25  ;;  %p804_p9 = scmp.lt.u32.totalorder %s800_s25, %s1030_s1 }
  0x19   :  { %p806_p10 = pnand %p804_p9, %p801_p8 }
  0x1b   :  { %809 = shalt.err (!%p806_p10)
}
  0x1c   :  { %s810_s2 = scalar_lea.vmem %s27_s20, 128  ;;  %p815_p12 = scmp.lt.s32.totalorder %s27_s20, %s27_s20 }
  0x1d   :  { %p811_p11 = scmp.ne.s32.totalorder %s27_s20, %s810_s2  ;;  %p816_p13 = scmp.lt.s32.totalorder %s810_s2, %s810_s2 }
  0x1f   :  { %p817_p0 = por %p816_p13, %p815_p12 }
  0x21   :  { %p818_p1 = pnand %p817_p0, %p811_p11 }
  0x23   :  { %821 = shalt.err (!%p818_p1)
}
  0x24   :  { %29 = dma.hbm_to_vmem [thread:$0]  %s1030_s1, 128, %s27_s20, [#allocation4]  }
  0x25   :  { %s822_s12 = scalar_lea.hbm %s1033_s4, 4096 }
  0x26   :  { %p823_p2 = scmp.ne.s32.totalorder %s1033_s4, %s822_s12  ;;  %p826_p3 = scmp.lt.u32.totalorder %s822_s12, %s1033_s4 }
  0x28   :  { %p828_p4 = pnand %p826_p3, %p823_p2 }
  0x2a   :  { %831 = shalt.err (!%p828_p4)
}
  0x2b   :  { %s832_s19 = scalar_lea.vmem %s50_s22, 4096  ;;  %p837_p6 = scmp.lt.s32.totalorder %s50_s22, %s50_s22 }
  0x2c   :  { %p833_p5 = scmp.ne.s32.totalorder %s50_s22, %s832_s19  ;;  %p838_p7 = scmp.lt.s32.totalorder %s832_s19, %s832_s19 }
  0x2e   :  { %p839_p8 = por %p838_p7, %p837_p6 }
  0x30   :  { %p840_p9 = pnand %p839_p8, %p833_p5 }
  0x32   :  { %843 = shalt.err (!%p840_p9)
}
  0x33   :  { %55 = dma.hbm_to_vmem [thread:$0]  %s1033_s4, 4096, %s50_s22, [#allocation7], %s897_s15, %s897_s15, %s898_s16  }
  0x34   :  { %s901_s21 = smov [#allocation9]   ;;  %s844_s26 = scalar_lea.hbm %s1035_s6, 2048 }
  0x35   :  { %s63_s23 = sshll.u32 %s901_s21, 4  ;;  %p845_p10 = scmp.ne.s32.totalorder %s1035_s6, %s844_s26  ;;  %s64_s23 = int_to_ptr.vmem [resolvable:$true] %s63_s23 }
  0x36   :  { %p848_p11 = scmp.lt.u32.totalorder %s844_s26, %s1035_s6 }
  0x38   :  { %p850_p12 = pnand %p848_p11, %p845_p10 }
  0x3a   :  { %853 = shalt.err (!%p850_p12)
}
  0x3b   :  { %s854_s28 = scalar_lea.vmem %s64_s23, 2048  ;;  %p859_p0 = scmp.lt.s32.totalorder %s64_s23, %s64_s23 }
  0x3c   :  { %p855_p13 = scmp.ne.s32.totalorder %s64_s23, %s854_s28  ;;  %p860_p1 = scmp.lt.s32.totalorder %s854_s28, %s854_s28 }
  0x3e   :  { %p861_p2 = por %p860_p1, %p859_p0 }
  0x40   :  { %p862_p3 = pnand %p861_p2, %p855_p13 }
  0x42   :  { %865 = shalt.err (!%p862_p3)
}
  0x43   :  { %s902_s4 = smov 64   ;;  %s903_s15 = smov 4  }
  0x44   :  { %69 = dma.hbm_to_vmem [thread:$0]  %s1035_s6, 2048, %s64_s23, [#allocation10], %s902_s4, %s902_s4, %s903_s15  }
  0x45   :  { %888 = dma.done.wait [#allocation4], 128  }
  0x46   :  { %889 = vsyncadd [#allocation4], 4294967168 }
  0x47   :  { %890 = dma.done.wait [#allocation7], 4480  }
  0x48   :  { %891 = vsyncadd [#allocation7], 4294962816 }
  0x49   :  { %892 = dma.done.wait [#allocation10], 2048  }
  0x4a   :  { %893 = vsyncadd [#allocation10], 4294965248  ;;  %v904_v0 = vmov 0   ;;  %vm122_vm0 = vcmask 1040384   ;;  %v707_v1 = vld [vmem:[#allocation6 + $0x4] ss:$8 sps:$4 sm:$0xff]   ;;  %v93_v55 = vlaneseq }
  0x4b   :  { %163 = vmatprep.mubr.bf16.mxu0 %v904_v0  ;;  %v709_v2 = vld [vmem:[#allocation6] ss:$8 sps:$4 sm:$0xff]   ;;  %v90_v3 = vld [vmem:[#allocation6 + $0x10] sm:$0x11]  ;;  %v124_v4 = vsel %vm122_vm0, 65535, %v904_v0  ;;  %v86_v5 = vld [vmem:[#allocation3] sm:$0xff]  ;;  %131 = vmatprep.subr.bf16.mxu0 %v707_v1 }
  0x4c   :  { %v624_v6 = vcombine.high %v90_v3, %v90_v3  ;;  %v623_v7 = vcombine.low %v90_v3, %v90_v3  ;;  %v712_v8 = vld [vmem:[#allocation8 + $0x4] ss:$8 sps:$4 sm:$0xff]   ;;  %132 = vmatpush1.bf16.msra.mxu0 %v709_v2  ;;  %v714_v9 = vld [vmem:[#allocation8] ss:$8 sps:$4 sm:$0xff]   ;;  %v715_v12 = vld [vmem:[#allocation8 + $0x14] ss:$8 sps:$4 sm:$0xff]   ;;  %v87_v14 = vpack.c.bf16 %v86_v5, %v86_v5 }
  0x4d   :  { %380 = vmatprep.subr.bf16.mxu1 %v712_v8  ;;  %v717_v13 = vld [vmem:[#allocation8 + $0x10] ss:$8 sps:$4 sm:$0xff]   ;;  %v718_v15 = vld [vmem:[#allocation8 + $0x24] ss:$8 sps:$4 sm:$0xff]   ;;  %vm118_vm1 = vcmask 138240   ;;  %v94_v56 = vshrl.u32 %v93_v55, 7 }
  0x4e   :  { %v129_v10 = vand.u32 %v624_v6, %v124_v4  ;;  %v126_v11 = vand.u32 %v623_v7, %v124_v4  ;;  %381 = vmatpush1.bf16.msra.mxu1 %v714_v9  ;;  %v720_v16 = vld [vmem:[#allocation8 + $0x20] ss:$8 sps:$4 sm:$0xff]   ;;  %v721_v17 = vld [vmem:[#allocation8 + $0x34] ss:$8 sps:$4 sm:$0xff]   ;;  %v723_v18 = vld [vmem:[#allocation8 + $0x30] ss:$8 sps:$4 sm:$0xff]  }
  0x4f   :  { %382 = vmatprep.subr.bf16.mxu1 %v715_v12  ;;  %v724_v19 = vld [vmem:[#allocation8 + $0x44] ss:$8 sps:$4 sm:$0xff]   ;;  %v726_v20 = vld [vmem:[#allocation8 + $0x40] ss:$8 sps:$4 sm:$0xff]   ;;  %v727_v21 = vld [vmem:[#allocation8 + $0x54] ss:$8 sps:$4 sm:$0xff]  }
  0x50   :  { %133 = vmatprep.subr.bf16.mxu0 %v129_v10  ;;  %v729_v22 = vld [vmem:[#allocation8 + $0x50] ss:$8 sps:$4 sm:$0xff]   ;;  %v730_v23 = vld [vmem:[#allocation8 + $0x64] ss:$8 sps:$4 sm:$0xff]   ;;  %v732_v24 = vld [vmem:[#allocation8 + $0x60] ss:$8 sps:$4 sm:$0xff]  }
  0x51   :  { %134 = vmatpush1.bf16.msra.mxu0 %v126_v11  ;;  %v733_v25 = vld [vmem:[#allocation8 + $0x74] ss:$8 sps:$4 sm:$0xff]   ;;  %v735_v26 = vld [vmem:[#allocation8 + $0x70] ss:$8 sps:$4 sm:$0xff]   ;;  %v736_v27 = vld [vmem:[#allocation8 + $0x84] ss:$8 sps:$4 sm:$0xff]  }
  0x52   :  { %383 = vmatpush1.bf16.msra.mxu1 %v717_v13  ;;  %v738_v28 = vld [vmem:[#allocation8 + $0x80] ss:$8 sps:$4 sm:$0xff]   ;;  %v739_v29 = vld [vmem:[#allocation8 + $0x94] ss:$8 sps:$4 sm:$0xff]   ;;  %v741_v30 = vld [vmem:[#allocation8 + $0x90] ss:$8 sps:$4 sm:$0xff]  }
  0x53   :  { %384 = vmatprep.subr.bf16.mxu1 %v718_v15  ;;  %v742_v31 = vld [vmem:[#allocation8 + $0xa4] ss:$8 sps:$4 sm:$0xff]   ;;  %v744_v32 = vld [vmem:[#allocation8 + $0xa0] ss:$8 sps:$4 sm:$0xff]   ;;  %v745_v33 = vld [vmem:[#allocation8 + $0xb4] ss:$8 sps:$4 sm:$0xff]  }
  0x54   :  { %625 = vmatmul.mubr.msk.bf16.vlgmr.msra.gmra.mrb[0].mxu0 %vm118_vm1, %v87_v14  ;;  %v747_v34 = vld [vmem:[#allocation8 + $0xb0] ss:$8 sps:$4 sm:$0xff]   ;;  %v748_v35 = vld [vmem:[#allocation8 + $0xc4] ss:$8 sps:$4 sm:$0xff]   ;;  %v750_v36 = vld [vmem:[#allocation8 + $0xc0] ss:$8 sps:$4 sm:$0xff]  }
  0x55   :  { %v751_v37 = vld [vmem:[#allocation8 + $0xd4] ss:$8 sps:$4 sm:$0xff]   ;;  %v753_v38 = vld [vmem:[#allocation8 + $0xd0] ss:$8 sps:$4 sm:$0xff]   ;;  %v754_v39 = vld [vmem:[#allocation8 + $0xe4] ss:$8 sps:$4 sm:$0xff]  }
  0x56   :  { %385 = vmatpush1.bf16.msra.mxu1 %v720_v16  ;;  %v756_v40 = vld [vmem:[#allocation8 + $0xe0] ss:$8 sps:$4 sm:$0xff]   ;;  %v757_v41 = vld [vmem:[#allocation8 + $0xf4] ss:$8 sps:$4 sm:$0xff]   ;;  %v759_v42 = vld [vmem:[#allocation8 + $0xf0] ss:$8 sps:$4 sm:$0xff]  }
  0x57   :  { %386 = vmatprep.subr.bf16.mxu1 %v721_v17  ;;  %v760_v43 = vld [vmem:[#allocation9 + $0x40] sm:$0xff]   ;;  %v762_v45 = vld [vmem:[#allocation9 + $0x48] sm:$0xff]   ;;  %v764_v47 = vld [vmem:[#allocation9 + $0x50] sm:$0xff]   ;;  %v95_v57 = vsub.s32 0, %v94_v56  ;;  %v99_v59 = vsub.s32 1, %v94_v56  ;;  %s905_s14 = smov [#allocation11]  }
  0x58   :  { %v761_v44 = vld [vmem:[#allocation9] sm:$0xff]   ;;  %675 = vmatprep.subr.bf16.mxu0 %v760_v43  ;;  %v763_v46 = vld [vmem:[#allocation9 + $0x8] sm:$0xff]   ;;  %v765_v48 = vld [vmem:[#allocation9 + $0x10] sm:$0xff]   ;;  %s610_s17 = sshll.u32 %s905_s14, 4  ;;  %s611_s17 = int_to_ptr.vmem [resolvable:$true] %s610_s17 }
  0x59   :  { %676 = vmatpush3.bf16.msra.mxu0 %v761_v44  ;;  %v766_v49 = vld [vmem:[#allocation9 + $0x58] sm:$0xff]   ;;  %v768_v51 = vld [vmem:[#allocation9 + $0x60] sm:$0xff]   ;;  %v770_v53 = vld [vmem:[#allocation9 + $0x68] sm:$0xff]   ;;  %s866_s18 = scalar_lea.vmem %s611_s17, 128  ;;  %p871_p5 = scmp.lt.s32.totalorder %s611_s17, %s611_s17 }
  0x5a   :  { %387 = vmatpush1.bf16.msra.mxu1 %v723_v18  ;;  %677 = vmatprep.subr.bf16.mxu0 %v762_v45  ;;  %v767_v50 = vld [vmem:[#allocation9 + $0x18] sm:$0xff]   ;;  %v769_v52 = vld [vmem:[#allocation9 + $0x20] sm:$0xff]   ;;  %v771_v54 = vld [vmem:[#allocation9 + $0x28] sm:$0xff]   ;;  %p867_p4 = scmp.ne.s32.totalorder %s611_s17, %s866_s18  ;;  %p872_p6 = scmp.lt.s32.totalorder %s866_s18, %s866_s18 }
  0x5b   :  { %388 = vmatprep.subr.bf16.mxu1 %v724_v19  ;;  %v91_v58 = vld [vmem:[%s1032_s3] sm:$0x3]  ;;  %v772_v8 = vld [vmem:[#allocation9 + $0x70] sm:$0xff]   ;;  %v774_v10 = vld [vmem:[#allocation9 + $0x78] sm:$0xff]  }
  0x5c   :  { %v96_v60 = vrot.slane %v91_v58, %v95_v57  ;;  %v100_v61 = vrot.slane %v91_v58, %v99_v59  ;;  %v773_v9 = vld [vmem:[#allocation9 + $0x30] sm:$0xff]   ;;  %v775_v11 = vld [vmem:[#allocation9 + $0x38] sm:$0xff]   ;;  %v208_v12 = vld [vmem:[%s1034_s5] sm:$0x3]  ;;  %p873_p7 = por %p872_p6, %p871_p5 }
  0x5d   :  { %678 = vmatpush3.bf16.msra.mxu0 %v763_v46  ;;  %v213_v13 = vrot.slane %v208_v12, %v95_v57  ;;  %v217_v14 = vrot.slane %v208_v12, %v99_v59 }
  0x5e   :  { %389 = vmatpush1.bf16.msra.mxu1 %v726_v20  ;;  %679 = vmatprep.subr.bf16.mxu0 %v764_v47  ;;  %p874_p8 = pnand %p873_p7, %p867_p4 }
  0x5f   :  { %390 = vmatprep.subr.bf16.mxu1 %v727_v21 }
  0x61   :  { %680 = vmatpush3.bf16.msra.mxu0 %v765_v48 }
  0x62   :  { %391 = vmatpush1.bf16.msra.mxu1 %v729_v22  ;;  %681 = vmatprep.subr.bf16.mxu0 %v766_v49 }
  0x63   :  { %392 = vmatprep.subr.bf16.mxu1 %v730_v23 }
  0x65   :  { %682 = vmatpush3.bf16.msra.mxu0 %v767_v50 }
  0x66   :  { %393 = vmatpush1.bf16.msra.mxu1 %v732_v24  ;;  %683 = vmatprep.subr.bf16.mxu0 %v768_v51 }
  0x67   :  { %394 = vmatprep.subr.bf16.mxu1 %v733_v25 }
  0x69   :  { %684 = vmatpush3.bf16.msra.mxu0 %v769_v52 }
  0x6a   :  { %395 = vmatpush1.bf16.msra.mxu1 %v735_v26  ;;  %685 = vmatprep.subr.bf16.mxu0 %v770_v53  ;;  %v658_v26 = vld [vmem:[%s1036_s7] ss:$0 sm:$0xff] }
  0x6b   :  { %396 = vmatprep.subr.bf16.mxu1 %v736_v27 }
  0x6d   :  { %686 = vmatpush3.bf16.msra.mxu0 %v771_v54 }
  0x6e   :  { %397 = vmatpush1.bf16.msra.mxu1 %v738_v28  ;;  %687 = vmatprep.subr.bf16.mxu0 %v772_v8 }
  0x6f   :  { %398 = vmatprep.subr.bf16.mxu1 %v739_v29 }
  0x71   :  { %688 = vmatpush3.bf16.msra.mxu0 %v773_v9 }
  0x72   :  { %399 = vmatpush1.bf16.msra.mxu1 %v741_v30  ;;  %689 = vmatprep.subr.bf16.mxu0 %v774_v10 }
  0x73   :  { %400 = vmatprep.subr.bf16.mxu1 %v742_v31 }
  0x75   :  { %690 = vmatpush3.bf16.msra.mxu0 %v775_v11 }
  0x76   :  { %401 = vmatpush1.bf16.msra.mxu1 %v744_v32  ;;  %v601_v32 = vstv %s1029_s0 }
  0x77   :  { %402 = vmatprep.subr.bf16.mxu1 %v745_v33 }
  0x7a   :  { %403 = vmatpush1.bf16.msra.mxu1 %v747_v34 }
  0x7b   :  { %404 = vmatprep.subr.bf16.mxu1 %v748_v35 }
  0x7e   :  { %405 = vmatpush1.bf16.msra.mxu1 %v750_v36 }
  0x7f   :  { %406 = vmatprep.subr.bf16.mxu1 %v751_v37 }
  0x82   :  { %407 = vmatpush1.bf16.msra.mxu1 %v753_v38 }
  0x83   :  { %408 = vmatprep.subr.bf16.mxu1 %v754_v39 }
  0x86   :  { %409 = vmatpush1.bf16.msra.mxu1 %v756_v40 }
  0x87   :  { %410 = vmatprep.subr.bf16.mxu1 %v757_v41 }
  0x8a   :  { %411 = vmatpush1.bf16.msra.mxu1 %v759_v42 }
 0x127   :  { %v165_v62 = vpop.f32.mrb[0].mxu0 }
 0x128   :  { %v166_v63 = vadd.f32 %v165_v62, %v96_v60  ;;  %v167_v0 = vpop.f32.mrb[1].mxu0 }
 0x129   :  { %v168_v1 = vadd.f32 %v167_v0, %v100_v61  ;;  %v169_v2 = vpop.f32.mrb[2].mxu0 }
 0x12a   :  { %v172_v3 = vmax.f32 %v166_v63, 0.0  ;;  %v170_v4 = vpop.f32.mrb[3].mxu0 }
 0x12b   :  { %v173_v5 = vmax.f32 %v168_v1, 0.0 }
 0x12c   :  { %v174_v7 = vpack.c.bf16 %v172_v3, %v172_v3 }
 0x12d   :  { %v175_v6 = vpack.c.bf16 %v173_v5, %v173_v5 }
 0x12f   :  { %412 = vmatprep.mubr.bf16.mxu1 %v175_v6 }
 0x130   :  { %413 = vmatmul.mubr.bf16.vlgmr.msra.gmra.mrb[0].mxu1 %v174_v7 }
 0x203   :  { %v414_v15 = vpop.f32.mrb[0].mxu1 }
 0x204   :  { %v415_v16 = vadd.f32 %v414_v15, %v213_v13  ;;  %v416_v17 = vpop.f32.mrb[1].mxu1 }
 0x205   :  { %v417_v18 = vadd.f32 %v416_v17, %v217_v14  ;;  %v418_v19 = vpop.f32.mrb[2].mxu1 }
 0x206   :  { %v421_v20 = vmax.f32 %v415_v16, 0.0  ;;  %v419_v21 = vpop.f32.mrb[3].mxu1 }
 0x207   :  { %v422_v22 = vmax.f32 %v417_v18, 0.0 }
 0x208   :  { %v423_v24 = vpack.c.bf16 %v421_v20, %v421_v20 }
 0x209   :  { %v424_v23 = vpack.c.bf16 %v422_v22, %v422_v22 }
 0x20b   :  { %592 = vmatprep.mubr.bf16.mxu0 %v424_v23 }
 0x20c   :  { %593 = vmatmul.mubr.bf16.vlgmr.msra.gmra.mrb[4].mxu0 %v423_v24 }
 0x2df   :  { %v691_v25 = vpop.f32.mrb[4].mxu0 }
 0x2e0   :  { %v692_v27 = vpop.f32.mrb[5].mxu0 }
 0x2e1   :  { %v693_v28 = vadd.f32 %v692_v27, %v691_v25  ;;  %v694_v29 = vpop.f32.mrb[6].mxu0 }
 0x2e2   :  { %v695_v30 = vpop.f32.mrb[7].mxu0 }
 0x2e3   :  { %v595_v31 = vadd.f32 %v693_v28, %v658_v26 }
 0x2e5   :  { %776 = vtanh.f32 %v595_v31 }
 0x2ef   :  { %v777_v33 = vpop.eup %776 }
 0x2f0   :  { %v602_v34 = vmul.f32 %v777_v33, %v601_v32 }
 0x2f2   :  { %603 = vst [vmem:[#allocation11] sm:$0xff] %v602_v34 }
 0x2f3   :  { %877 = shalt.err (!%p874_p8)
}
 0x2f4   :  { %s878_s1 = scalar_lea.hbm %s1037_s8, 128 }
 0x2f5   :  { %p879_p9 = scmp.ne.s32.totalorder %s1037_s8, %s878_s1  ;;  %p882_p10 = scmp.lt.u32.totalorder %s878_s1, %s1037_s8 }
 0x2f7   :  { %p884_p11 = pnand %p882_p10, %p879_p9 }
 0x2f9   :  { %887 = shalt.err (!%p884_p11)
}
 0x2fa   :  { %613 = dma.vmem_to_hbm [thread:$0]  %s611_s17, 128, %s1037_s8, [#allocation5]  }
 0x2fb   :  { %894 = dma.done.wait [#allocation5], 128  }
 0x2fc   :  { %895 = vsyncadd [#allocation5], 4294967168 }
 0x2fd   :  { %617 = vsyncpa [#allocation4], 1 }
 0x2fe   :  { %618 = vsyncpa [#allocation7], 1 }
 0x2ff   :  { %619 = vsyncpa [#allocation10], 1 }
 0x300   :  { %620 = vsyncpa [#allocation5], 1 }

</bundles_post_ra>
